<compile_context>
chip_gen: v7x
topology: tpu7x:2x2x1
jax: 0.10.0
libtpu: 0.0.40
codegen_flags: <defaults>
</compile_context>

<pallas_src>
import functools

import jax
import jax.numpy as jnp
from jax import lax
from jax.experimental import pallas as pl
from jax.experimental.pallas import tpu as pltpu

_LANE = 128
_SUB = 8


def _l_color_kernel(x_ref, o_ref, acc_ref, *, h, inv_hw, mask_rows):
    # x_ref:   (b_tile, 3, t_h, w)   input row-block (VMEM, auto-pipelined)
    # o_ref:   (b_tile, 1, 1, 1)     output block (resident across the row sweep)
    # acc_ref: (b_tile, 3, 8, w)     f32 lane/sublane-folded partial-sum scratch
    b_tile, _c, t_h, w = x_ref.shape
    k = pl.program_id(1)

    @pl.when(k == 0)
    def _init():
        acc_ref[...] = jnp.zeros_like(acc_ref)

    row_base = k * t_h  # global row index of the first row in this block

    def row_mask(off, nrows):
        rows = lax.broadcasted_iota(jnp.int32, (nrows, w), 0) + (row_base + off)
        return rows < h

    def add_group(off, nrows, mask):
        # Accumulate an (nrows, w) row-group for every (batch, channel) pair.
        # Per-(b, c) statements keep live vregs small (~ceil(w/128) each) so the
        # VPU adds stream under the HBM DMA without register spills.
        for ib in range(b_tile):
            for ic in range(3):
                blk = x_ref[ib, ic, pl.ds(off, nrows), :].astype(jnp.float32)
                if mask is not None:
                    blk = jnp.where(mask, blk, 0.0)
                acc_ref[ib, ic, 0:nrows, :] += blk

    nr = t_h // _SUB       # full 8-row groups in this block
    r_rem = t_h % _SUB     # leftover rows (only possible when the block covers all of h)

    if nr > 0:
        if nr <= 4:
            # Short trip count: static unroll with fully static offsets.
            for r in range(nr):
                off = r * _SUB
                add_group(off, _SUB, row_mask(off, _SUB) if mask_rows else None)
        else:
            def body(r, carry):
                off = pl.multiple_of(r * _SUB, _SUB)
                add_group(off, _SUB, row_mask(off, _SUB) if mask_rows else None)
                return carry

            lax.fori_loop(0, nr, body, 0, unroll=4)

    if r_rem > 0:
        off = nr * _SUB
        add_group(off, r_rem, row_mask(off, r_rem) if mask_rows else None)

    @pl.when(k == pl.num_programs(1) - 1)
    def _finalize():
        # Single lane reduce then sublane reduce over the whole accumulator,
        # then per-channel means and the color-constancy formula (tiny tail).
        tot = jnp.sum(acc_ref[...], axis=3, keepdims=True)   # (b_tile, 3, 8, 1)
        tot = jnp.sum(tot, axis=2, keepdims=True)             # (b_tile, 3, 1, 1)
        means = tot * inv_hw
        mr = means[:, 0:1]
        mg = means[:, 1:2]
        mb = means[:, 2:3]
        drg = (mr - mg) ** 2
        drb = (mr - mb) ** 2
        dgb = (mb - mg) ** 2
        kk = jnp.sqrt(drg * drg + drb * drb + dgb * dgb)       # (b_tile, 1, 1, 1)
        o_ref[...] = kk.astype(o_ref.dtype)


def _round_up(v, m):
    return (v + m - 1) // m * m


def l_color(x, *, target_block_bytes=4 * 1024 * 1024):
    """Pallas implementation of L_color.forward. x: (b, 3, h, w) -> (b, 1, 1, 1)."""
    b, c, h, w = x.shape
    assert c == 3, "L_color expects exactly 3 channels (RGB)"
    itemsize = x.dtype.itemsize
    out_dtype = x.dtype

    # --- Row tiling: fixed-size row blocks (multiple of 8 rows, ~target bytes of
    # real data); ragged last block is masked inside the kernel (no jnp.pad).
    row_bytes = 3 * w * itemsize
    rows_budget = max(_SUB, (target_block_bytes // row_bytes) // _SUB * _SUB)
    if h <= rows_budget:
        t_h = h                       # full extent (need not be a multiple of 8)
        grid_h = 1
    else:
        t_h = rows_budget             # multiple of 8
        grid_h = pl.cdiv(h, t_h)
    mask_rows = grid_h > 1 and (h % t_h) != 0

    # --- Batch tiling: keep >= 2 blocks on the "parallel" axis whenever b >= 2
    # so v7x can shard batch tiles across its two TensorCores.
    if grid_h == 1:
        img_bytes = 3 * h * w * itemsize
        max_b_tile = min(64, max(1, target_block_bytes // img_bytes))
    else:
        max_b_tile = 1
    b_tile = 1
    if b >= 2:
        cands = [d for d in range(1, b // 2 + 1) if b % d == 0 and d <= max_b_tile]
        if cands:
            b_tile = max(cands)
    # TODO(synk): for b == 1, additionally split the row axis as "parallel" with a
    # small second-stage combine so the second v7x TensorCore is not left idle.
    grid_b = b // b_tile

    # --- VMEM budget: double-buffered input block + accumulator scratch + margin.
    sub_pack = _SUB * max(1, 4 // itemsize)        # 8 (f32) / 16 (bf16) sublane tile
    in_block_bytes = (b_tile * 3 * _round_up(t_h, sub_pack)
                      * _round_up(w, _LANE) * itemsize)
    acc_bytes = b_tile * 3 * _SUB * _round_up(w, _LANE) * 4
    vmem_limit = int(min(48 * 1024 * 1024,
                         max(16 * 1024 * 1024,
                             2 * in_block_bytes + acc_bytes + (2 << 20))))

    inv_hw = 1.0 / float(h * w)
    kernel = functools.partial(_l_color_kernel, h=h, inv_hw=inv_hw,
                               mask_rows=mask_rows)

    cost = pl.CostEstimate(
        flops=b * 3 * h * w,          # ~1 add per element; purely bandwidth-bound
        transcendentals=b,            # one sqrt per batch element
        bytes_accessed=b * 3 * h * w * itemsize + b * itemsize,
    )

    return pl.pallas_call(
        kernel,
        out_shape=jax.ShapeDtypeStruct((b, 1, 1, 1), out_dtype),
        grid=(grid_b, grid_h),
        in_specs=[pl.BlockSpec((b_tile, 3, t_h, w), lambda i, k: (i, 0, k, 0))],
        out_specs=pl.BlockSpec((b_tile, 1, 1, 1), lambda i, k: (i, 0, 0, 0)),
        scratch_shapes=[pltpu.VMEM((b_tile, 3, _SUB, w), jnp.float32)],
        compiler_params=pltpu.CompilerParams(
            dimension_semantics=("parallel", "arbitrary"),
            vmem_limit_bytes=vmem_limit,
        ),
        cost_estimate=cost,
    )(x)


def _reference(x):
    mean_rgb = jnp.mean(x.astype(jnp.float32), axis=(2, 3), keepdims=True)
    mr = mean_rgb[:, 0:1]
    mg = mean_rgb[:, 1:2]
    mb = mean_rgb[:, 2:3]
    drg = (mr - mg) ** 2
    drb = (mr - mb) ** 2
    dgb = (mb - mg) ** 2
    return jnp.sqrt(drg ** 2 + drb ** 2 + dgb ** 2).astype(x.dtype)


if __name__ == "__main__":
    key = jax.random.PRNGKey(0)

    # Test 1: canonical small shape; one row block, 2 parallel batch blocks.
    x1 = jax.random.uniform(key, (2, 3, 16, 16), dtype=jnp.float32)
    o1 = jax.block_until_ready(l_color(x1))
    assert o1.shape == (2, 1, 1, 1), o1.shape
    assert jnp.allclose(o1, _reference(x1), atol=1e-5, rtol=1e-5), (o1, _reference(x1))

    # Test 2: h and w not multiples of 8 / 128 (exercises the sublane-remainder path).
    x2 = jax.random.uniform(jax.random.fold_in(key, 1), (2, 3, 10, 10), dtype=jnp.float32)
    o2 = jax.block_until_ready(l_color(x2))
    assert o2.shape == (2, 1, 1, 1), o2.shape
    assert jnp.allclose(o2, _reference(x2), atol=1e-5, rtol=1e-5), (o2, _reference(x2))

    # Test 3: multi-step row reduction with a masked ragged last block
    # (t_h = 24 rows, grid_h = 3, h % t_h != 0) and 4 parallel batch blocks.
    x3 = jax.random.uniform(jax.random.fold_in(key, 2), (4, 3, 64, 64), dtype=jnp.float32)
    o3 = jax.block_until_ready(l_color(x3, target_block_bytes=24 * 3 * 64 * 4))
    assert o3.shape == (4, 1, 1, 1), o3.shape
    assert jnp.allclose(o3, _reference(x3), atol=1e-5, rtol=1e-5), (o3, _reference(x3))

    # Test 4: narrow ragged image, multi-step reduction (w < 128, h % 8 != 0).
    x4 = jax.random.uniform(jax.random.fold_in(key, 3), (2, 3, 20, 48), dtype=jnp.float32)
    o4 = jax.block_until_ready(l_color(x4, target_block_bytes=8 * 3 * 48 * 4))
    assert o4.shape == (2, 1, 1, 1), o4.shape
    assert jnp.allclose(o4, _reference(x4), atol=1e-5, rtol=1e-5), (o4, _reference(x4))

    # Test 5: larger single block (nr = 16) exercising the fori_loop row fold.
    x5 = jax.random.uniform(jax.random.fold_in(key, 4), (2, 3, 128, 128), dtype=jnp.float32)
    o5 = jax.block_until_ready(l_color(x5))
    assert o5.shape == (2, 1, 1, 1), o5.shape
    assert jnp.allclose(o5, _reference(x5), atol=1e-5, rtol=1e-5), (o5, _reference(x5))

    print("KERNEL_OK")
</pallas_src>

<mosaic_0001>
module attributes {stable_mosaic.version = 11 : i64} {
  func.func @_l_color_kernel(%arg0: i32, %arg1: i32, %arg2: memref<1x3x16x16xf32, #tpu.memory_space<vmem>>, %arg3: memref<1x1x1x1xf32, #tpu.memory_space<vmem>>, %arg4: memref<1x3x8x16xf32, #tpu.memory_space<vmem>>) attributes {dimension_semantics = [#tpu.dimension_semantics<parallel>, #tpu.dimension_semantics<arbitrary>], iteration_bounds = array<i64: 2, 1>, scalar_prefetch = 0 : i64, scratch_operands = 1 : i64, tpu.core_type = #tpu.core_type<tc>, window_params = [{transform_indices = @transform_0, window_bounds = array<i64: 1, 3, 16, 16>}, {transform_indices = @transform_1, window_bounds = array<i64: 1, 1, 1, 1>}]} {
    %c0_i32 = arith.constant 0 : i32
    %0 = arith.cmpi eq, %arg1, %c0_i32 : i32
    %1 = arith.extui %0 : i1 to i32
    %c0_i32_0 = arith.constant 0 : i32
    %2 = arith.cmpi ne, %1, %c0_i32_0 : i32
    scf.if %2 {
      %cst = arith.constant 0.000000e+00 : f32
      %54 = vector.broadcast %cst : f32 to vector<1x3x8x16xf32>
      %c0_71 = arith.constant 0 : index
      %c0_72 = arith.constant 0 : index
      %c0_73 = arith.constant 0 : index
      %c0_74 = arith.constant 0 : index
      %55 = vector.load %arg4[%c0_71, %c0_72, %c0_73, %c0_74] : memref<1x3x8x16xf32, #tpu.memory_space<vmem>>, vector<1x3x8x16xf32>
      tpu.vector_store %arg4[%c0_71, %c0_72, %c0_73, %c0_74], %54 {strides = array<i32>} : memref<1x3x8x16xf32, #tpu.memory_space<vmem>>, vector<1x3x8x16xf32>,
    } else {
    }
    %c0 = arith.constant 0 : index
    %c0_1 = arith.constant 0 : index
    %c0_2 = arith.constant 0 : index
    %c0_3 = arith.constant 0 : index
    %3 = vector.load %arg2[%c0, %c0_1, %c0_2, %c0_3] : memref<1x3x16x16xf32, #tpu.memory_space<vmem>>, vector<1x1x8x16xf32>
    %4 = vector.shape_cast %3 : vector<1x1x8x16xf32> to vector<8x16xf32>
    %c0_4 = arith.constant 0 : index
    %c0_5 = arith.constant 0 : index
    %c0_6 = arith.constant 0 : index
    %c0_7 = arith.constant 0 : index
    %5 = vector.load %arg4[%c0_4, %c0_5, %c0_6, %c0_7] : memref<1x3x8x16xf32, #tpu.memory_space<vmem>>, vector<1x1x8x16xf32>
    %6 = vector.shape_cast %5 : vector<1x1x8x16xf32> to vector<8x16xf32>
    %7 = arith.addf %6, %4 : vector<8x16xf32>
    %c0_8 = arith.constant 0 : index
    %c0_9 = arith.constant 0 : index
    %c0_10 = arith.constant 0 : index
    %c0_11 = arith.constant 0 : index
    %8 = vector.load %arg4[%c0_8, %c0_9, %c0_10, %c0_11] : memref<1x3x8x16xf32, #tpu.memory_space<vmem>>, vector<1x1x8x16xf32>
    %9 = vector.shape_cast %8 : vector<1x1x8x16xf32> to vector<8x16xf32>
    %10 = vector.shape_cast %7 : vector<8x16xf32> to vector<1x1x8x16xf32>
    tpu.vector_store %arg4[%c0_8, %c0_9, %c0_10, %c0_11], %10 {strides = array<i32>} : memref<1x3x8x16xf32, #tpu.memory_space<vmem>>, vector<1x1x8x16xf32>,
    %c0_12 = arith.constant 0 : index
    %c1 = arith.constant 1 : index
    %c0_13 = arith.constant 0 : index
    %c0_14 = arith.constant 0 : index
    %11 = vector.load %arg2[%c0_12, %c1, %c0_13, %c0_14] : memref<1x3x16x16xf32, #tpu.memory_space<vmem>>, vector<1x1x8x16xf32>
    %12 = vector.shape_cast %11 : vector<1x1x8x16xf32> to vector<8x16xf32>
    %c0_15 = arith.constant 0 : index
    %c1_16 = arith.constant 1 : index
    %c0_17 = arith.constant 0 : index
    %c0_18 = arith.constant 0 : index
    %13 = vector.load %arg4[%c0_15, %c1_16, %c0_17, %c0_18] : memref<1x3x8x16xf32, #tpu.memory_space<vmem>>, vector<1x1x8x16xf32>
    %14 = vector.shape_cast %13 : vector<1x1x8x16xf32> to vector<8x16xf32>
    %15 = arith.addf %14, %12 : vector<8x16xf32>
    %c0_19 = arith.constant 0 : index
    %c1_20 = arith.constant 1 : index
    %c0_21 = arith.constant 0 : index
    %c0_22 = arith.constant 0 : index
    %16 = vector.load %arg4[%c0_19, %c1_20, %c0_21, %c0_22] : memref<1x3x8x16xf32, #tpu.memory_space<vmem>>, vector<1x1x8x16xf32>
    %17 = vector.shape_cast %16 : vector<1x1x8x16xf32> to vector<8x16xf32>
    %18 = vector.shape_cast %15 : vector<8x16xf32> to vector<1x1x8x16xf32>
    tpu.vector_store %arg4[%c0_19, %c1_20, %c0_21, %c0_22], %18 {strides = array<i32>} : memref<1x3x8x16xf32, #tpu.memory_space<vmem>>, vector<1x1x8x16xf32>,
    %c0_23 = arith.constant 0 : index
    %c2 = arith.constant 2 : index
    %c0_24 = arith.constant 0 : index
    %c0_25 = arith.constant 0 : index
    %19 = vector.load %arg2[%c0_23, %c2, %c0_24, %c0_25] : memref<1x3x16x16xf32, #tpu.memory_space<vmem>>, vector<1x1x8x16xf32>
    %20 = vector.shape_cast %19 : vector<1x1x8x16xf32> to vector<8x16xf32>
    %c0_26 = arith.constant 0 : index
    %c2_27 = arith.constant 2 : index
    %c0_28 = arith.constant 0 : index
    %c0_29 = arith.constant 0 : index
    %21 = vector.load %arg4[%c0_26, %c2_27, %c0_28, %c0_29] : memref<1x3x8x16xf32, #tpu.memory_space<vmem>>, vector<1x1x8x16xf32>
    %22 = vector.shape_cast %21 : vector<1x1x8x16xf32> to vector<8x16xf32>
    %23 = arith.addf %22, %20 : vector<8x16xf32>
    %c0_30 = arith.constant 0 : index
    %c2_31 = arith.constant 2 : index
    %c0_32 = arith.constant 0 : index
    %c0_33 = arith.constant 0 : index
    %24 = vector.load %arg4[%c0_30, %c2_31, %c0_32, %c0_33] : memref<1x3x8x16xf32, #tpu.memory_space<vmem>>, vector<1x1x8x16xf32>
    %25 = vector.shape_cast %24 : vector<1x1x8x16xf32> to vector<8x16xf32>
    %26 = vector.shape_cast %23 : vector<8x16xf32> to vector<1x1x8x16xf32>
    tpu.vector_store %arg4[%c0_30, %c2_31, %c0_32, %c0_33], %26 {strides = array<i32>} : memref<1x3x8x16xf32, #tpu.memory_space<vmem>>, vector<1x1x8x16xf32>,
    %c0_34 = arith.constant 0 : index
    %c0_35 = arith.constant 0 : index
    %c8 = arith.constant 8 : index
    %c0_36 = arith.constant 0 : index
    %27 = vector.load %arg2[%c0_34, %c0_35, %c8, %c0_36] : memref<1x3x16x16xf32, #tpu.memory_space<vmem>>, vector<1x1x8x16xf32>
    %28 = vector.shape_cast %27 : vector<1x1x8x16xf32> to vector<8x16xf32>
    %c0_37 = arith.constant 0 : index
    %c0_38 = arith.constant 0 : index
    %c0_39 = arith.constant 0 : index
    %c0_40 = arith.constant 0 : index
    %29 = vector.load %arg4[%c0_37, %c0_38, %c0_39, %c0_40] : memref<1x3x8x16xf32, #tpu.memory_space<vmem>>, vector<1x1x8x16xf32>
    %30 = vector.shape_cast %29 : vector<1x1x8x16xf32> to vector<8x16xf32>
    %31 = arith.addf %30, %28 : vector<8x16xf32>
    %c0_41 = arith.constant 0 : index
    %c0_42 = arith.constant 0 : index
    %c0_43 = arith.constant 0 : index
    %c0_44 = arith.constant 0 : index
    %32 = vector.load %arg4[%c0_41, %c0_42, %c0_43, %c0_44] : memref<1x3x8x16xf32, #tpu.memory_space<vmem>>, vector<1x1x8x16xf32>
    %33 = vector.shape_cast %32 : vector<1x1x8x16xf32> to vector<8x16xf32>
    %34 = vector.shape_cast %31 : vector<8x16xf32> to vector<1x1x8x16xf32>
    tpu.vector_store %arg4[%c0_41, %c0_42, %c0_43, %c0_44], %34 {strides = array<i32>} : memref<1x3x8x16xf32, #tpu.memory_space<vmem>>, vector<1x1x8x16xf32>,
    %c0_45 = arith.constant 0 : index
    %c1_46 = arith.constant 1 : index
    %c8_47 = arith.constant 8 : index
    %c0_48 = arith.constant 0 : index
    %35 = vector.load %arg2[%c0_45, %c1_46, %c8_47, %c0_48] : memref<1x3x16x16xf32, #tpu.memory_space<vmem>>, vector<1x1x8x16xf32>
    %36 = vector.shape_cast %35 : vector<1x1x8x16xf32> to vector<8x16xf32>
    %c0_49 = arith.constant 0 : index
    %c1_50 = arith.constant 1 : index
    %c0_51 = arith.constant 0 : index
    %c0_52 = arith.constant 0 : index
    %37 = vector.load %arg4[%c0_49, %c1_50, %c0_51, %c0_52] : memref<1x3x8x16xf32, #tpu.memory_space<vmem>>, vector<1x1x8x16xf32>
    %38 = vector.shape_cast %37 : vector<1x1x8x16xf32> to vector<8x16xf32>
    %39 = arith.addf %38, %36 : vector<8x16xf32>
    %c0_53 = arith.constant 0 : index
    %c1_54 = arith.constant 1 : index
    %c0_55 = arith.constant 0 : index
    %c0_56 = arith.constant 0 : index
    %40 = vector.load %arg4[%c0_53, %c1_54, %c0_55, %c0_56] : memref<1x3x8x16xf32, #tpu.memory_space<vmem>>, vector<1x1x8x16xf32>
    %41 = vector.shape_cast %40 : vector<1x1x8x16xf32> to vector<8x16xf32>
    %42 = vector.shape_cast %39 : vector<8x16xf32> to vector<1x1x8x16xf32>
    tpu.vector_store %arg4[%c0_53, %c1_54, %c0_55, %c0_56], %42 {strides = array<i32>} : memref<1x3x8x16xf32, #tpu.memory_space<vmem>>, vector<1x1x8x16xf32>,
    %c0_57 = arith.constant 0 : index
    %c2_58 = arith.constant 2 : index
    %c8_59 = arith.constant 8 : index
    %c0_60 = arith.constant 0 : index
    %43 = vector.load %arg2[%c0_57, %c2_58, %c8_59, %c0_60] : memref<1x3x16x16xf32, #tpu.memory_space<vmem>>, vector<1x1x8x16xf32>
    %44 = vector.shape_cast %43 : vector<1x1x8x16xf32> to vector<8x16xf32>
    %c0_61 = arith.constant 0 : index
    %c2_62 = arith.constant 2 : index
    %c0_63 = arith.constant 0 : index
    %c0_64 = arith.constant 0 : index
    %45 = vector.load %arg4[%c0_61, %c2_62, %c0_63, %c0_64] : memref<1x3x8x16xf32, #tpu.memory_space<vmem>>, vector<1x1x8x16xf32>
    %46 = vector.shape_cast %45 : vector<1x1x8x16xf32> to vector<8x16xf32>
    %47 = arith.addf %46, %44 : vector<8x16xf32>
    %c0_65 = arith.constant 0 : index
    %c2_66 = arith.constant 2 : index
    %c0_67 = arith.constant 0 : index
    %c0_68 = arith.constant 0 : index
    %48 = vector.load %arg4[%c0_65, %c2_66, %c0_67, %c0_68] : memref<1x3x8x16xf32, #tpu.memory_space<vmem>>, vector<1x1x8x16xf32>
    %49 = vector.shape_cast %48 : vector<1x1x8x16xf32> to vector<8x16xf32>
    %50 = vector.shape_cast %47 : vector<8x16xf32> to vector<1x1x8x16xf32>
    tpu.vector_store %arg4[%c0_65, %c2_66, %c0_67, %c0_68], %50 {strides = array<i32>} : memref<1x3x8x16xf32, #tpu.memory_space<vmem>>, vector<1x1x8x16xf32>,
    %c0_i32_69 = arith.constant 0 : i32
    %51 = arith.cmpi eq, %arg1, %c0_i32_69 : i32
    %52 = arith.extui %51 : i1 to i32
    %c0_i32_70 = arith.constant 0 : i32
    %53 = arith.cmpi ne, %52, %c0_i32_70 : i32
    scf.if %53 {
      %c0_71 = arith.constant 0 : index
      %c0_72 = arith.constant 0 : index
      %c0_73 = arith.constant 0 : index
      %c0_74 = arith.constant 0 : index
      %54 = vector.load %arg4[%c0_71, %c0_72, %c0_73, %c0_74] : memref<1x3x8x16xf32, #tpu.memory_space<vmem>>, vector<1x3x8x16xf32>
      %cst = arith.constant dense<0.000000e+00> : vector<1x3x8xf32>
      %55 = vector.multi_reduction <add>, %54, %cst [3] : vector<1x3x8x16xf32> to vector<1x3x8xf32>
      %56 = vector.shape_cast %55 : vector<1x3x8xf32> to vector<1x3x8x1xf32>
      %cst_75 = arith.constant dense<0.000000e+00> : vector<1x3x1xf32>
      %57 = vector.multi_reduction <add>, %56, %cst_75 [2] : vector<1x3x8x1xf32> to vector<1x3x1xf32>
      %58 = vector.shape_cast %57 : vector<1x3x1xf32> to vector<1x3x1x1xf32>
      %cst_76 = arith.constant 3.906250e-03 : f32
      %59 = vector.broadcast %cst_76 : f32 to vector<1x3x1x1xf32>
      %60 = arith.mulf %58, %59 : vector<1x3x1x1xf32>
      %61 = vector.extract_strided_slice %60 {offsets = [0, 0, 0, 0], sizes = [1, 1, 1, 1], strides = [1, 1, 1, 1]} : vector<1x3x1x1xf32> to vector<1x1x1x1xf32>
      %62 = vector.extract_strided_slice %60 {offsets = [0, 1, 0, 0], sizes = [1, 1, 1, 1], strides = [1, 1, 1, 1]} : vector<1x3x1x1xf32> to vector<1x1x1x1xf32>
      %63 = vector.extract_strided_slice %60 {offsets = [0, 2, 0, 0], sizes = [1, 1, 1, 1], strides = [1, 1, 1, 1]} : vector<1x3x1x1xf32> to vector<1x1x1x1xf32>
      %64 = arith.subf %61, %62 : vector<1x1x1x1xf32>
      %65 = arith.mulf %64, %64 : vector<1x1x1x1xf32>
      %66 = arith.subf %61, %63 : vector<1x1x1x1xf32>
      %67 = arith.mulf %66, %66 : vector<1x1x1x1xf32>
      %68 = arith.subf %63, %62 : vector<1x1x1x1xf32>
      %69 = arith.mulf %68, %68 : vector<1x1x1x1xf32>
      %70 = arith.mulf %65, %65 : vector<1x1x1x1xf32>
      %71 = arith.mulf %67, %67 : vector<1x1x1x1xf32>
      %72 = arith.addf %70, %71 : vector<1x1x1x1xf32>
      %73 = arith.mulf %69, %69 : vector<1x1x1x1xf32>
      %74 = arith.addf %72, %73 : vector<1x1x1x1xf32>
      %75 = math.sqrt %74 : vector<1x1x1x1xf32>
      %c0_77 = arith.constant 0 : index
      %c0_78 = arith.constant 0 : index
      %c0_79 = arith.constant 0 : index
      %c0_80 = arith.constant 0 : index
      %76 = vector.load %arg3[%c0_77, %c0_78, %c0_79, %c0_80] : memref<1x1x1x1xf32, #tpu.memory_space<vmem>>, vector<1x1x1x1xf32>
      tpu.vector_store %arg3[%c0_77, %c0_78, %c0_79, %c0_80], %75 {strides = array<i32>} : memref<1x1x1x1xf32, #tpu.memory_space<vmem>>, vector<1x1x1x1xf32>,
    } else {
    }
    return
  }
  func.func @transform_0(%arg0: i32, %arg1: i32) -> (i32, i32, i32, i32) {
    %c0_i32 = arith.constant 0 : i32
    %c0_i32_0 = arith.constant 0 : i32
    %c0_i32_1 = arith.constant 0 : i32
    return %arg0, %c0_i32, %arg1, %c0_i32_0 : i32, i32, i32, i32
  }
  func.func @transform_1(%arg0: i32, %arg1: i32) -> (i32, i32, i32, i32) {
    %c0_i32 = arith.constant 0 : i32
    %c0_i32_0 = arith.constant 0 : i32
    %c0_i32_1 = arith.constant 0 : i32
    %c0_i32_2 = arith.constant 0 : i32
    return %arg0, %c0_i32, %c0_i32_0, %c0_i32_1 : i32, i32, i32, i32
  }
}

</mosaic_0001>

<bundles_post_ra>
// kernel: tpu_custom_call.1
= control target key start
LH: loop header
LB: loop body
LE: loop exit
PB: predicated region body
PF: predicated region fallthrough
CT: control target
= control target key end

     0   :  { %6 = vsyncpa [#allocation4], 0  ;;  %s614_s0 = inlined_call_operand.hbm [shape: f32[2,3,16,16], index: 0, kind: input, shape index: {}]   ;;  %s615_s1 = inlined_call_operand.vmem [shape: f32[2,1,1,1], index: 1, kind: output, shape index: {}]  }
   0x1   :  { %8 = vsyncpa [#allocation4 + $0x1], 0  ;;  %s484_s6 = smov 0   ;;  %s486_s7 = smov 0  }
   0x2   :  { %s488_s8 = smov 0   ;;  %s490_s9 = smov 0  }
   0x3   :  { %s492_s10 = smov 0   ;;  %s494_s11 = smov 0  }
   0x4 LB: > { %s313_s12 = sadd.s32 4294967295, %s468_s11   ;;  %s26_s13 = sadd.s32 1, %s464_s10  ;;  %s468_s11 = sphi %s494_s11, %s14_s11   ;;  %s464_s10 = sphi %s492_s10, %s622_s10   ;;  %s460_s9 = sphi %s490_s9, %s621_s9   ;;  %s456_s8 = sphi %s488_s8, %s620_s8   ;;  %s452_s7 = sphi %s486_s7, %s619_s7   ;;  %s448_s6 = sphi %s484_s6, %s618_s6  }
   0x5   : > { %p28_p0 = scmp.ge.s32.totalorder %s26_s13, 2  ;;  %s35_s14 = sadd.s32 1, %s456_s8 }
   0x6   : > { %p42_p1 = scmp.ne.s32.totalorder %s456_s8, %s452_s7  ;;  %p43_p2 = scmp.eq.s32.totalorder %s468_s11, 0 }
   0x7   : > { %s624_s13 = smov (%p28_p0, %s26_s13), 0  ;;  %p48_p4 = scmp.ne.s32.totalorder %s452_s7, %s448_s6 }
   0x8   : > { %p44_p3 = por %p43_p2, %p42_p1  ;;  %s30_s15 = ssub.s32 %s464_s10, %s624_s13 }
   0x9   : > { %p49_p5 = scmp.eq.s32.totalorder %s313_s12, 0  ;;  %p33_p6 = scmp.eq.s32.totalorder %s30_s15, 0 }
   0xa   : > { %p334_p8 = scmp.lt.s32.totalorder %s468_s11, 2  ;;  %s98_s18 = sand.u32 1, %s456_s8  }
   0xb   : > { %p523_p7 = por %p49_p5, %p48_p4  ;;  %s326_s19 = smul.u32 768, %s464_s10 }
   0xc   : > { %s529_s17 = scalar_select %p33_p6, %s456_s8, %s35_s14  }
   0xd   : > { %s325_s20 = smul.u32 48, %s98_s18  ;;  %s536_s23 = scalar_lea.hbm %s614_s0, %s326_s19 }
   0xe   : > { %p538_p9 = pnand %p334_p8, %p44_p3  ;;  %s544_s27 = scalar_lea.sflag [#allocation4], %s98_s18 }
   0xf   : > { %s102_s25 = scalar_lea.vmem [#allocation3], %s325_s20  ;;  %s388_s28 = scalar_lea.hbm %s536_s23, 768 }
  0x10   : > { %s111_s26 = sshll.u32 %s102_s25, 4  ;;  %p389_p10 = scmp.ne.s32.totalorder %s536_s23, %s388_s28  ;;  %s542_s26 = int_to_ptr.vmem [resolvable:$true] %s111_s26 }
  0x11   : > { %p390_p11 = pneg %p538_p9  ;;  %s393_s2 = scalar_lea.hbm %s614_s0, 1536 }
  0x12   : > { %p394_p0 = scmp.lt.u32.totalorder %s536_s23, %s614_s0  ;;  %p395_p1 = scmp.lt.u32.totalorder %s393_s2, %s388_s28 }
  0x13   : > { %p391_p12 = pnand %p390_p11, %p389_p10  ;;  %p397_p3 = scmp.lt.u32.totalorder %s388_s28, %s536_s23 }
  0x14   : > { %p396_p2 = por %p395_p1, %p394_p0 }
  0x15   : > { %p392_p13 = pneg %p391_p12 }
  0x16   : > { %p398_p4 = por %p397_p3, %p396_p2 }
  0x18   : > { %p399_p5 = pnand %p398_p4, %p392_p13 }
  0x1a   : > { %402 = shalt.err (!%p399_p5)
}
  0x1b   : > { %s403_s5 = scalar_lea.vmem %s542_s26, 768  ;;  %s470_s6 = smov [#allocation3]  }
  0x1c   : > { %p404_p6 = scmp.ne.s32.totalorder %s542_s26, %s403_s5  ;;  %s408_s12 = sshll.u32 %s470_s6, 4  ;;  %s409_s12 = int_to_ptr.vmem [resolvable:$false] %s408_s12 }
  0x1d   : > { %s410_s14 = scalar_lea.vmem %s409_s12, 1536  ;;  %p411_p12 = scmp.lt.s32.totalorder %s542_s26, %s409_s12 }
  0x1e   : > { %p406_p8 = pnand %p404_p6, %p390_p11  ;;  %p412_p0 = scmp.lt.s32.totalorder %s410_s14, %s403_s5 }
  0x20   : > { %p407_p10 = pneg %p406_p8  ;;  %p413_p1 = por %p412_p0, %p411_p12 }
  0x22   : > { %p414_p2 = pnand %p413_p1, %p407_p10 }
  0x24   : > { %417 = shalt.err (!%p414_p2)
}
  0x25   : > { %s471_s15 = smov 128   ;;  %s472_s18 = smov 8  }
  0x26   : > { %333 = dma.hbm_to_vmem [thread:$0]  (!%p538_p9), %s536_s23, 768, %s542_s26, %s544_s27, %s471_s15, %s471_s15, %s472_s18  }
  0x27   : > { %p318_p11 = scmp.ge.s32.totalorder %s468_s11, 1  ;;  %p119_p13 = scmp.lt.s32.totalorder %s468_s11, 3 }
  0x29   : > { %p120_p3 = pnand %p318_p11, %p119_p13 }
  0x2a   : > { %s125_s19 = sand.u32 (!%p120_p3), 1, %s452_s7  }
  0x2b   : > { %123 = sbr.rel (%p120_p3) target bundleno = 267 (0x10b), region = 24  ;;  %s126_s21 = scalar_lea.sflag (!%p120_p3), [#allocation4], %s125_s19 }
  0x2c   : > { %s327_s20 = smul.u32 (!%p120_p3), 48, %s125_s19 }
  0x2e   : > { %s129_s22 = scalar_lea.vmem (!%p120_p3), [#allocation3], %s327_s20 }
  0x32   : > { %443 = dma.done.wait (%p523_p7), %s126_s21, 768  }
  0x33   : > { %445 = vsyncadd (%p523_p7), %s126_s21, 4294966528  ;;  %vm154_vm0 = vcmask 130048   ;;  %v473_v0 = vmov 0.0   ;;  %v320_v1 = vld [vmem:[%s129_s22 + $0x20] sm:$0xff]  ;;  %v319_v7 = vld [vmem:[%s129_s22 + $0x10] sm:$0xff]  ;;  %p147_p7 = scmp.lt.s32.totalorder %s460_s9, 1 }
  0x34   : > { %157 = vst.msk [vmem:[#allocation2 + $0x10] sm:$0xff] %vm154_vm0, %v473_v0  ;;  %155 = vst.msk [vmem:[#allocation2] sm:$0xff] %vm154_vm0, %v473_v0  ;;  %v158_v2 = vld [vmem:[%s129_s22] sm:$0xff]  ;;  %v322_v10 = vld [vmem:[%s129_s22 + $0x28] sm:$0xff]  ;;  %vm241_vm1 = vcmask 0  }
  0x35   : > { %156 = vst.msk [vmem:[#allocation2 + $0x8] sm:$0xff] %vm154_vm0, %v473_v0  ;;  %v175_v11 = vld [vmem:[%s129_s22 + $0x8] sm:$0xff]  ;;  %v321_v12 = vld [vmem:[%s129_s22 + $0x18] sm:$0xff]  ;;  %s626_s9 = smov (!%p147_p7, %s460_s9), 1 }
  0x36   : > { %s149_s24 = scalar_lea.vmem %s615_s1, %s626_s9 }
  0x3b   : > { %v172_v3 = vld [vmem:[#allocation2 + $0x10] sm:$0xff]  ;;  %v159_v4 = vld [vmem:[#allocation2] sm:$0xff] }
  0x3c   : > { %v173_v5 = vadd.f32 %v320_v1, %v172_v3  ;;  %v160_v6 = vadd.f32 %v159_v4, %v158_v2  ;;  %v166_v8 = vld [vmem:[#allocation2 + $0x8] sm:$0xff] }
  0x3d   : > { %v167_v9 = vadd.f32 %v319_v7, %v166_v8 }
  0x3e   : > { %174 = vst.msk [vmem:[#allocation2 + $0x10] sm:$0xff] %vm154_vm0, %v173_v5  ;;  %162 = vst.msk [vmem:[#allocation2] sm:$0xff] %vm154_vm0, %v160_v6 }
  0x3f   : > { %168 = vst.msk [vmem:[#allocation2 + $0x8] sm:$0xff] %vm154_vm0, %v167_v9 }
  0x45   : > { %v184_v13 = vld [vmem:[#allocation2 + $0x10] sm:$0xff]  ;;  %v176_v14 = vld [vmem:[#allocation2] sm:$0xff] }
  0x46   : > { %v185_v15 = vadd.f32 %v322_v10, %v184_v13  ;;  %v177_v16 = vadd.f32 %v176_v14, %v175_v11  ;;  %v180_v17 = vld [vmem:[#allocation2 + $0x8] sm:$0xff] }
  0x47   : > { %v181_v18 = vadd.f32 %v321_v12, %v180_v17 }
  0x48   : > { %186 = vst.msk [vmem:[#allocation2 + $0x10] sm:$0xff] %vm154_vm0, %v185_v15  ;;  %178 = vst.msk [vmem:[#allocation2] sm:$0xff] %vm154_vm0, %v177_v16 }
  0x49   : > { %182 = vst.msk [vmem:[#allocation2 + $0x8] sm:$0xff] %vm154_vm0, %v181_v18 }
  0x4f   : > { %v192_v19 = vld [vmem:[#allocation2 + $0x10] sm:$0xff]  ;;  %v190_v20 = vld [vmem:[#allocation2] sm:$0xff] }
  0x50   : > { %v199_v21 = vsel %vm154_vm0, %v192_v19, 0.0  ;;  %v193_v22 = vsel %vm154_vm0, %v190_v20, 0.0  ;;  %v191_v23 = vld [vmem:[#allocation2 + $0x8] sm:$0xff] }
  0x51   : > { %200 = vadd.xlane.f32.xlu1 %v199_v21  ;;  %194 = vadd.xlane.f32.xlu0 %v193_v22  ;;  %v196_v24 = vsel %vm154_vm0, %v191_v23, 0.0 }
  0x55   : > { %197 = vadd.xlane.f32.xlu0 %v196_v24 }
  0xde   : > { %v201_v25 = vpop.xlane.xlu1 %200  ;;  %v195_v26 = vpop.xlane.xlu0 %194 }
  0xdf   : > { %v214_v27 = vrot.slane %v201_v25, 4  ;;  %v202_v28 = vrot.slane %v195_v26, 4 }
  0xe1   : > { %v215_v29 = vadd.f32 %v214_v27, %v201_v25  ;;  %v203_v30 = vadd.f32 %v202_v28, %v195_v26 }
  0xe2   : > { %v198_v31 = vpop.xlane.xlu0 %197 }
  0xe3   : > { %v216_v32 = vrot.slane %v215_v29, 2  ;;  %v204_v33 = vrot.slane %v203_v30, 2  ;;  %v208_v34 = vrot.slane %v198_v31, 4 }
  0xe5   : > { %v217_v35 = vadd.f32 %v216_v32, %v215_v29  ;;  %v205_v36 = vadd.f32 %v204_v33, %v203_v30  ;;  %v209_v37 = vadd.f32 %v208_v34, %v198_v31 }
  0xe7   : > { %v218_v38 = vrot.slane %v217_v35, 1  ;;  %v206_v39 = vrot.slane %v205_v36, 1  ;;  %v210_v40 = vrot.slane %v209_v37, 2 }
  0xe9   : > { %v219_v41 = vadd.f32 %v218_v38, %v217_v35  ;;  %v207_v42 = vadd.f32 %v206_v39, %v205_v36  ;;  %v211_v43 = vadd.f32 %v210_v40, %v209_v37 }
  0xeb   : > { %v222_v44 = vmul.f32 0.00390625, %v219_v41  ;;  %v220_v45 = vmul.f32 0.00390625, %v207_v42  ;;  %v212_v46 = vrot.slane %v211_v43, 1 }
  0xed   : > { %v225_v47 = vsub.f32 %v220_v45, %v222_v44  ;;  %v213_v48 = vadd.f32 %v212_v46, %v211_v43 }
  0xef   : > { %v221_v49 = vmul.f32 0.00390625, %v213_v48  ;;  %v226_v50 = vmul.f32 %v225_v47, %v225_v47 }
  0xf1   : > { %v223_v51 = vsub.f32 %v220_v45, %v221_v49  ;;  %v227_v52 = vsub.f32 %v222_v44, %v221_v49  ;;  %v230_v55 = vmul.f32 %v226_v50, %v226_v50 }
  0xf3   : > { %v224_v53 = vmul.f32 %v223_v51, %v223_v51  ;;  %v228_v54 = vmul.f32 %v227_v52, %v227_v52 }
  0xf5   : > { %v229_v56 = vmul.f32 %v224_v53, %v224_v53  ;;  %v232_v58 = vmul.f32 %v228_v54, %v228_v54 }
  0xf7   : > { %v231_v57 = vadd.f32 %v230_v55, %v229_v56 }
  0xf9   : > { %v233_v59 = vadd.f32 %v232_v58, %v231_v57 }
  0xfb   : > { %386 = vrsqrt.f32 %v233_v59  ;;  %vm236_vm2 = vcmp.eq.f32.partialorder %v233_v59, inf  ;;  %v239_v62 = vand.u32 2147483648, %v233_v59  ;;  %vm238_vm3 = vcmp.eq.f32.partialorder %v233_v59, 0.0 }
 0x105   : > { %v387_v60 = vpop.eup %386 }
 0x106   : > { %v235_v61 = vmul.f32 %v387_v60, %v233_v59 }
 0x108   : > { %v237_v63 = vsel %vm236_vm2, %v233_v59, %v235_v61 }
 0x109   : > { %v240_v0 = vsel %vm238_vm3, %v239_v62, %v237_v63 }
 0x10a   : > { %242 = vst.msk [vmem:[%s149_s24] sm:$0x1] %vm241_vm1, %v240_v0 }
 0x10b PF: > { %s14_s11 = sadd.s32 1, %s468_s11   ;;  %s618_s6 = smov %s452_s7 }
 0x10c   : > { %p11_p9 = scmp.ge.s32.totalorder %s14_s11, 4   ;;  %s619_s7 = smov %s456_s8 }
 0x10d   : > { %s620_s8 = smov %s529_s17  ;;  %s621_s9 = smov %s464_s10 }
 0x10e   : > { %s622_s10 = smov %s624_s13  ;;  %13 = sbr.rel (!%p11_p9) target bundleno = 4 (0x4), region = 76 }
 0x115   :  { %260 = vsyncpa [#allocation4], 1 }
 0x116   :  { %262 = vsyncpa [#allocation4 + $0x1], 1 }

</bundles_post_ra>
